<compile_context>
chip_gen: v6e
topology: v6e:2x2x1
jax: 0.10.0
libtpu: 0.0.40
codegen_flags: <defaults>
</compile_context>

<pallas_src>
import functools

import jax
import jax.numpy as jnp
from jax import lax
from jax.experimental import pallas as pl
from jax.experimental.pallas import tpu as pltpu


def _round_up(v, m):
    return ((v + m - 1) // m) * m


def _downsample_kernel(p_ref, w_ref, o_ref, *, wq, l_cw, l_out):
    """One lane-tile of the fused conv(3x3, s=2, p=2) + maxpool(2, s=1).

    p_ref: (1, 4*Cin, TILE_IN)  zero-padded stride-2 parity fields of IPT images
           packed contiguously along the lane axis (per-image stride Hq*Wq);
           (parity-field, channel) on sublanes, flat conv-grid spatial on lanes.
    w_ref: (4, Coutp, 4*Cin)    conv1||conv2 taps regrouped by flat lane shift.
    o_ref: (1, Coutp, TILE_OUT) pooled conv map (f32), lane-dense.
    """
    shifts = (0, 1, wq, wq + 1)
    # 3x3/stride-2 conv == 4 lane-shift groups of the parity fields.  Each group
    # is one MXU dot with K = 4*Cin; no RHS materialization / relayout.
    conv = jnp.dot(w_ref[0], p_ref[0, :, 0:l_cw],
                   preferred_element_type=jnp.float32)
    for i in range(1, 4):
        s = shifts[i]
        conv = conv + jnp.dot(w_ref[i], p_ref[0, :, s:s + l_cw],
                              preferred_element_type=jnp.float32)
    # Fused MaxPool2d(kernel=2, stride=1): lane shifts by 1 (next col) and
    # wq (next row) on the flat conv map.
    pooled = conv[:, :l_out]
    for s in (1, wq, wq + 1):
        pooled = jnp.maximum(pooled, conv[:, s:s + l_out])
    o_ref[0] = pooled.astype(o_ref.dtype)


@functools.partial(jax.jit, static_argnames=("compute_dtype", "target_lanes"))
def downsampling_forward(x, w1, w2, *, compute_dtype=jnp.bfloat16,
                         target_lanes=8192):
    """x: (N, Cin, H, W); w1, w2: (Cout//2, Cin, 3, 3) OIHW. Returns f32 NCHW."""
    N, Cin, H, W = x.shape
    w = jnp.concatenate([w1, w2], axis=0)              # (Cout, Cin, 3, 3)
    Cout = w.shape[0]
    Coutp = _round_up(Cout, 8)

    # Conv2d(k=3, s=2, p=2) output size; pool(k=2, s=1) -> (Ho-1, Wo-1).
    Ho = (H + 1) // 2 + 1
    Wo = (W + 1) // 2 + 1
    Hq, Wq = Ho + 1, Wo + 1                            # conv grid + 1 halo row/col
    L_img = Hq * Wq                                    # flat lanes per image

    # Pack IPT whole images per grid step along the lane axis.
    IPT = max(1, min(N, target_lanes // L_img))
    n_tiles = (N + IPT - 1) // IPT
    NP = n_tiles * IPT
    L_valid = IPT * L_img
    TILE_OUT = _round_up(L_valid, 128)                 # stored output lanes / tile
    L_cw = TILE_OUT + Wq + 1                           # conv width computed in-kernel
    TILE_IN = _round_up(L_cw + Wq + 1, 128)            # parity-field lanes / tile
    # invariants: pool slices need  Wq+1 + TILE_OUT <= L_cw   (equality)
    #             tap  slices need  Wq+1 + L_cw     <= TILE_IN

    # --- one-pass glue: pad (batch->NP, Conv2d padding=2, spatial->2Hq x 2Wq),
    # one reshape+transpose splits the 4 stride-2 parity fields and lays IPT
    # images per tile contiguously (stride L_img) on the lane axis.
    xq = x.astype(compute_dtype)
    xpad = jnp.pad(xq, ((0, NP - N), (0, 0),
                        (2, 2 * Hq - H - 2), (2, 2 * Wq - W - 2)))
    xr = xpad.reshape(n_tiles, IPT, Cin, Hq, 2, Wq, 2)
    xr = jnp.transpose(xr, (0, 4, 6, 2, 1, 3, 5))      # (T, a, b, Cin, IPT, Hq, Wq)
    pstack = xr.reshape(n_tiles, 4 * Cin, L_valid)
    pstack = jnp.pad(pstack, ((0, 0), (0, 0), (0, TILE_IN - L_valid)))

    # Regroup the 9 taps by flat lane shift s = (kh//2)*Wq + (kw//2): 4 shift
    # groups, each a (Coutp, 4*Cin) matrix over (parity-field, cin) columns.
    wm = jnp.zeros((4, Coutp, 4, Cin), w.dtype)
    for kh in range(3):
        for kw in range(3):
            sidx = (kh // 2) * 2 + (kw // 2)
            f = (kh % 2) * 2 + (kw % 2)
            wm = wm.at[sidx, :Cout, f, :].set(w[:, :, kh, kw])
    w_flat = wm.reshape(4, Coutp, 4 * Cin).astype(compute_dtype)

    kernel = functools.partial(_downsample_kernel, wq=Wq, l_cw=L_cw,
                               l_out=TILE_OUT)

    step_bytes = (4 * Cin * TILE_IN * pstack.dtype.itemsize
                  + Coutp * TILE_OUT * 4
                  + w_flat.size * w_flat.dtype.itemsize
                  + 2 * Coutp * L_cw * 4)              # conv + pooled f32 temps
    vmem_limit = int(min(96 * 2 ** 20, max(32 * 2 ** 20, 8 * step_bytes)))

    # TODO(synk): for a single image whose flat conv grid exceeds `target_lanes`
    # (e.g. the first LEDNet downsampler at 512x1024), add a sub-image lane-tile
    # grid axis with a (Wq+1)-lane duplicated halo per tile; with whole-image
    # tiles the per-step VMEM stays well under 32 MiB for all LEDNet shapes.
    out_flat = pl.pallas_call(
        kernel,
        out_shape=jax.ShapeDtypeStruct((n_tiles, Coutp, TILE_OUT), jnp.float32),
        grid_spec=pltpu.PrefetchScalarGridSpec(
            num_scalar_prefetch=0,
            grid=(n_tiles,),
            in_specs=[
                pl.BlockSpec((1, 4 * Cin, TILE_IN), lambda t: (t, 0, 0)),
                pl.BlockSpec((4, Coutp, 4 * Cin), lambda t: (0, 0, 0)),
            ],
            out_specs=pl.BlockSpec((1, Coutp, TILE_OUT), lambda t: (t, 0, 0)),
        ),
        compiler_params=pltpu.CompilerParams(
            dimension_semantics=("parallel",),
            vmem_limit_bytes=vmem_limit),
    )(pstack, w_flat)

    # Output lanes are already channel-major / per-image contiguous: drop the
    # garbage halo rows/cols and un-pack images.
    out = out_flat[:, :Cout, :L_valid].reshape(n_tiles, Cout, IPT, Hq, Wq)
    out = out.transpose(0, 2, 1, 3, 4).reshape(NP, Cout, Hq, Wq)
    return out[:N, :, :Ho - 1, :Wo - 1]                # (N, Cout, Ho-1, Wo-1)


def _reference(x, w1, w2):
    dn = lax.conv_dimension_numbers(x.shape, w1.shape, ("NCHW", "OIHW", "NCHW"))

    def conv_pool(w):
        c = lax.conv_general_dilated(
            x, w, window_strides=(2, 2), padding=((2, 2), (2, 2)),
            dimension_numbers=dn)
        return lax.reduce_window(
            c, -jnp.inf, lax.max, (1, 1, 2, 2), (1, 1, 1, 1), "VALID")

    return jnp.concatenate([conv_pool(w1), conv_pool(w2)], axis=1)


if __name__ == "__main__":
    key = jax.random.PRNGKey(0)
    k1, k2, k3 = jax.random.split(key, 3)

    N, Cin, H, W = 2, 4, 16, 16
    Cout = 8   # out_channels of the Downsampling block (each conv makes Cout//2)

    x = jax.random.normal(k1, (N, Cin, H, W), jnp.float32)
    w1 = jax.random.normal(k2, (Cout // 2, Cin, 3, 3), jnp.float32) * 0.1
    w2 = jax.random.normal(k3, (Cout // 2, Cin, 3, 3), jnp.float32) * 0.1

    out = jax.block_until_ready(downsampling_forward(x, w1, w2))

    # Reference on the same bf16-quantized operands (the kernel uses bf16 inputs
    # with f32 accumulation), so only f32 summation order differs.
    xq = x.astype(jnp.bfloat16).astype(jnp.float32)
    w1q = w1.astype(jnp.bfloat16).astype(jnp.float32)
    w2q = w2.astype(jnp.bfloat16).astype(jnp.float32)
    ref = jax.block_until_ready(_reference(xq, w1q, w2q))

    assert out.shape == ref.shape == (N, Cout, 8, 8), (out.shape, ref.shape)
    err = float(jnp.abs(out - ref).max())
    assert jnp.allclose(out, ref, atol=1e-3, rtol=1e-3), err

    print("KERNEL_OK")
</pallas_src>

<mosaic_0001>
module attributes {stable_mosaic.version = 11 : i64} {
  func.func @_downsample_kernel(%arg0: i32, %arg1: memref<1x16x384xbf16, #tpu.memory_space<vmem>>, %arg2: memref<4x8x16xbf16, #tpu.memory_space<vmem>>, %arg3: memref<1x8x256xf32, #tpu.memory_space<vmem>>) attributes {dimension_semantics = [#tpu.dimension_semantics<parallel>], iteration_bounds = array<i64: 1>, scalar_prefetch = 0 : i64, scratch_operands = 0 : i64, tpu.core_type = #tpu.core_type<tc>, window_params = [{transform_indices = @transform_0, window_bounds = array<i64: 1, 16, 384>}, {pipeline_mode = #tpu.pipeline_mode<synchronous>, transform_indices = @transform_1, window_bounds = array<i64: 4, 8, 16>}, {transform_indices = @transform_2, window_bounds = array<i64: 1, 8, 256>}]} {
    %c0 = arith.constant 0 : index
    %c0_0 = arith.constant 0 : index
    %c0_1 = arith.constant 0 : index
    %0 = vector.load %arg2[%c0, %c0_0, %c0_1] : memref<4x8x16xbf16, #tpu.memory_space<vmem>>, vector<1x8x16xbf16>
    %1 = vector.shape_cast %0 : vector<1x8x16xbf16> to vector<8x16xbf16>
    %c0_2 = arith.constant 0 : index
    %c0_3 = arith.constant 0 : index
    %c0_4 = arith.constant 0 : index
    %2 = vector.load %arg1[%c0_2, %c0_3, %c0_4] : memref<1x16x384xbf16, #tpu.memory_space<vmem>>, vector<1x16x267xbf16>
    %3 = vector.shape_cast %2 : vector<1x16x267xbf16> to vector<16x267xbf16>
    %cst = arith.constant dense<0.000000e+00> : vector<8x267xf32>
    %4 = tpu.matmul %1, %3, %cst {dimension_numbers = #tpu.dot_dimension_numbers<[1], [0], [0], [1], [0, 0, 1, 1], [], []>} : vector<8x16xbf16>, vector<16x267xbf16>, vector<8x267xf32> -> vector<8x267xf32>
    %c1 = arith.constant 1 : index
    %c0_5 = arith.constant 0 : index
    %c0_6 = arith.constant 0 : index
    %5 = vector.load %arg2[%c1, %c0_5, %c0_6] : memref<4x8x16xbf16, #tpu.memory_space<vmem>>, vector<1x8x16xbf16>
    %6 = vector.shape_cast %5 : vector<1x8x16xbf16> to vector<8x16xbf16>
    %c0_7 = arith.constant 0 : index
    %c0_8 = arith.constant 0 : index
    %c1_9 = arith.constant 1 : index
    %7 = vector.load %arg1[%c0_7, %c0_8, %c1_9] : memref<1x16x384xbf16, #tpu.memory_space<vmem>>, vector<1x16x267xbf16>
    %8 = vector.shape_cast %7 : vector<1x16x267xbf16> to vector<16x267xbf16>
    %cst_10 = arith.constant dense<0.000000e+00> : vector<8x267xf32>
    %9 = tpu.matmul %6, %8, %cst_10 {dimension_numbers = #tpu.dot_dimension_numbers<[1], [0], [0], [1], [0, 0, 1, 1], [], []>} : vector<8x16xbf16>, vector<16x267xbf16>, vector<8x267xf32> -> vector<8x267xf32>
    %10 = arith.addf %4, %9 : vector<8x267xf32>
    %c2 = arith.constant 2 : index
    %c0_11 = arith.constant 0 : index
    %c0_12 = arith.constant 0 : index
    %11 = vector.load %arg2[%c2, %c0_11, %c0_12] : memref<4x8x16xbf16, #tpu.memory_space<vmem>>, vector<1x8x16xbf16>
    %12 = vector.shape_cast %11 : vector<1x8x16xbf16> to vector<8x16xbf16>
    %c0_13 = arith.constant 0 : index
    %c0_14 = arith.constant 0 : index
    %c10 = arith.constant 10 : index
    %13 = vector.load %arg1[%c0_13, %c0_14, %c10] : memref<1x16x384xbf16, #tpu.memory_space<vmem>>, vector<1x16x267xbf16>
    %14 = vector.shape_cast %13 : vector<1x16x267xbf16> to vector<16x267xbf16>
    %cst_15 = arith.constant dense<0.000000e+00> : vector<8x267xf32>
    %15 = tpu.matmul %12, %14, %cst_15 {dimension_numbers = #tpu.dot_dimension_numbers<[1], [0], [0], [1], [0, 0, 1, 1], [], []>} : vector<8x16xbf16>, vector<16x267xbf16>, vector<8x267xf32> -> vector<8x267xf32>
    %16 = arith.addf %10, %15 : vector<8x267xf32>
    %c3 = arith.constant 3 : index
    %c0_16 = arith.constant 0 : index
    %c0_17 = arith.constant 0 : index
    %17 = vector.load %arg2[%c3, %c0_16, %c0_17] : memref<4x8x16xbf16, #tpu.memory_space<vmem>>, vector<1x8x16xbf16>
    %18 = vector.shape_cast %17 : vector<1x8x16xbf16> to vector<8x16xbf16>
    %c0_18 = arith.constant 0 : index
    %c0_19 = arith.constant 0 : index
    %c11 = arith.constant 11 : index
    %19 = vector.load %arg1[%c0_18, %c0_19, %c11] : memref<1x16x384xbf16, #tpu.memory_space<vmem>>, vector<1x16x267xbf16>
    %20 = vector.shape_cast %19 : vector<1x16x267xbf16> to vector<16x267xbf16>
    %cst_20 = arith.constant dense<0.000000e+00> : vector<8x267xf32>
    %21 = tpu.matmul %18, %20, %cst_20 {dimension_numbers = #tpu.dot_dimension_numbers<[1], [0], [0], [1], [0, 0, 1, 1], [], []>} : vector<8x16xbf16>, vector<16x267xbf16>, vector<8x267xf32> -> vector<8x267xf32>
    %22 = arith.addf %16, %21 : vector<8x267xf32>
    %23 = vector.extract_strided_slice %22 {offsets = [0, 0], sizes = [8, 256], strides = [1, 1]} : vector<8x267xf32> to vector<8x256xf32>
    %24 = vector.extract_strided_slice %22 {offsets = [0, 1], sizes = [8, 256], strides = [1, 1]} : vector<8x267xf32> to vector<8x256xf32>
    %25 = arith.maximumf %23, %24 : vector<8x256xf32>
    %26 = vector.extract_strided_slice %22 {offsets = [0, 10], sizes = [8, 256], strides = [1, 1]} : vector<8x267xf32> to vector<8x256xf32>
    %27 = arith.maximumf %25, %26 : vector<8x256xf32>
    %28 = vector.extract_strided_slice %22 {offsets = [0, 11], sizes = [8, 256], strides = [1, 1]} : vector<8x267xf32> to vector<8x256xf32>
    %29 = arith.maximumf %27, %28 : vector<8x256xf32>
    %c0_21 = arith.constant 0 : index
    %c0_22 = arith.constant 0 : index
    %c0_23 = arith.constant 0 : index
    %30 = vector.load %arg3[%c0_21, %c0_22, %c0_23] : memref<1x8x256xf32, #tpu.memory_space<vmem>>, vector<1x8x256xf32>
    %31 = vector.shape_cast %30 : vector<1x8x256xf32> to vector<8x256xf32>
    %32 = vector.shape_cast %29 : vector<8x256xf32> to vector<1x8x256xf32>
    tpu.vector_store %arg3[%c0_21, %c0_22, %c0_23], %32 {strides = array<i32>} : memref<1x8x256xf32, #tpu.memory_space<vmem>>, vector<1x8x256xf32>,
    return
  }
  func.func @transform_0(%arg0: i32) -> (i32, i32, i32) {
    %c0_i32 = arith.constant 0 : i32
    %c0_i32_0 = arith.constant 0 : i32
    %c0_i32_1 = arith.constant 0 : i32
    return %arg0, %c0_i32, %c0_i32_0 : i32, i32, i32
  }
  func.func @transform_1(%arg0: i32) -> (i32, i32, i32) {
    %c0_i32 = arith.constant 0 : i32
    %c0_i32_0 = arith.constant 0 : i32
    %c0_i32_1 = arith.constant 0 : i32
    %c0_i32_2 = arith.constant 0 : i32
    return %c0_i32, %c0_i32_0, %c0_i32_1 : i32, i32, i32
  }
  func.func @transform_2(%arg0: i32) -> (i32, i32, i32) {
    %c0_i32 = arith.constant 0 : i32
    %c0_i32_0 = arith.constant 0 : i32
    %c0_i32_1 = arith.constant 0 : i32
    return %arg0, %c0_i32, %c0_i32_0 : i32, i32, i32
  }
}

</mosaic_0001>

<bundles_post_ra>
// kernel: downsampling_forward.1
= control target key start
LH: loop header
LB: loop body
LE: loop exit
PB: predicated region body
PF: predicated region fallthrough
CT: control target
= control target key end

     0   :  { %v522_v1 = vmov 0.0   ;;  %vm523_vm0 = vmmov 0   ;;  %v524_v3 = vmov 0   ;;  %s525_s13 = smov 127   ;;  %s526_s16 = smov 118   ;;  %vm38_vm1 = vcmask 1039360   ;;  %s624_s0 = inlined_call_operand.vmem [shape: bf16[1,16,384], index: 0, kind: input, shape index: {}]   ;;  %s625_s1 = inlined_call_operand.vmem [shape: bf16[4,8,16], index: 1, kind: input, shape index: {}]   ;;  %s626_s2 = inlined_call_operand.vmem [shape: f32[1,8,256], index: 2, kind: output, shape index: {}]  }
   0x1   :  { %v518_v0 = vld [vmem:[%s624_s0 + $0x4] ss:$12 sps:$4 sm:$0xff]   ;;  %488 = vmatprep.subr.bf16.mxu1 %v522_v1  ;;  %490 = vmatprep.mubr.msk.bf16.mxu1 %vm523_vm0, %v522_v1  ;;  %v520_v2 = vld [vmem:[%s624_s0] ss:$12 sps:$4 sm:$0xff]   ;;  %v521_v4 = vld [vmem:[%s624_s0 + $0x8] ss:$12 sps:$4 sm:$0xff]  }
   0x2   :  { %80 = vmatprep.mubr.bf16.mxu0 %v524_v3  ;;  %34 = vrot.lane.b32.xlu0 %v518_v0, %s525_s13  ;;  %s527_s17 = smov 117   ;;  %v466_v9 = vld [vmem:[%s625_s1 + $0x4] sm:$0xf]  ;;  %vm44_vm2 = vcmask 130048   ;;  %vm224_vm3 = vcmask 965632   ;;  %vm325_vm4 = vcmask 957440  }
   0x3   :  { %32 = vrot.lane.b32.xlu1 %v520_v2, %s525_s13  ;;  %v12_v15 = vld [vmem:[%s625_s1] sm:$0xf]  ;;  %v474_v21 = vld [vmem:[%s625_s1 + $0x8] sm:$0xf]  ;;  %v477_v23 = vld [vmem:[%s625_s1 + $0xc] sm:$0xf] }
   0x6   :  { %36 = vrot.lane.b32.xlu0 %v521_v4, %s525_s13 }
   0x7   :  { %220 = vrot.lane.b32.xlu1 %v518_v0, %s526_s16 }
   0xa   :  { %222 = vrot.lane.b32.xlu0 %v521_v4, %s526_s16 }
   0xb   :  { %218 = vrot.lane.b32.xlu1 %v520_v2, %s526_s16 }
   0xe   :  { %321 = vrot.lane.b32.xlu0 %v518_v0, %s527_s17 }
   0xf   :  { %323 = vrot.lane.b32.xlu1 %v521_v4, %s527_s17 }
  0x12   :  { %319 = vrot.lane.b32.xlu0 %v520_v2, %s527_s17 }
  0x74   :  { %v35_v5 = vpop.permute.xlu0 %34 }
  0x75   :  { %v33_v6 = vpop.permute.xlu1 %32 }
  0x76   :  { %v39_v11 = vsel %vm38_vm1, %v33_v6, %v35_v5 }
  0x78   :  { %v37_v7 = vpop.permute.xlu0 %36 }
  0x79   :  { %489 = vmatpush3.bf16.msra.mxu1 %v37_v7  ;;  %v40_v8 = vsel %vm38_vm1, %v35_v5, %v37_v7  ;;  %v221_v10 = vpop.permute.xlu1 %220 }
  0x7a   :  { %62 = vmatprep.subr.bf16.mxu0 %v40_v8  ;;  %494 = vmatprep.subr.bf16.mxu1 %v522_v1 }
  0x7b   :  { %63 = vmatpush1.bf16.msra.mxu0 %v39_v11 }
  0x7c   :  { %491 = vmatmul.mubr.msk.bf16.vlgmr.msra.gmra.mxu1 %vm44_vm2, %v466_v9  ;;  %149 = vmatprep.subr.bf16.mxu0 %v518_v0  ;;  %v223_v12 = vpop.permute.xlu0 %222 }
  0x7d   :  { %495 = vmatpush3.bf16.msra.mxu1 %v521_v4  ;;  %496 = vmatprep.mubr.msk.bf16.mxu1 %vm523_vm0, %v522_v1  ;;  %v226_v13 = vsel %vm224_vm3, %v221_v10, %v223_v12  ;;  %v219_v14 = vpop.permute.xlu1 %218 }
  0x7e   :  { %470 = vmatmul.mubr.msk.bf16.vlgmr.msra.gmra.mxu0 %vm44_vm2, %v466_v9  ;;  %500 = vmatprep.subr.bf16.mxu1 %v522_v1  ;;  %v225_v18 = vsel %vm224_vm3, %v219_v14, %v221_v10 }
  0x7f   :  { %150 = vmatpush1.bf16.msra.mxu0 %v520_v2  ;;  %167 = vmatprep.mubr.bf16.mxu0 %v524_v3 }
  0x80   :  { %247 = vmatprep.subr.bf16.mxu0 %v226_v13  ;;  %v322_v17 = vpop.permute.xlu0 %321 }
  0x81   :  { %v324_v16 = vpop.permute.xlu1 %323 }
  0x82   :  { %v327_v19 = vsel %vm325_vm4, %v322_v17, %v324_v16 }
  0x84   :  { %497 = vmatmul.mubr.msk.bf16.vlgmr.msra.gmra.mxu1 %vm44_vm2, %v12_v15  ;;  %v320_v20 = vpop.permute.xlu0 %319 }
  0x85   :  { %501 = vmatpush3.bf16.msra.mxu1 %v223_v12  ;;  %502 = vmatprep.mubr.msk.bf16.mxu1 %vm523_vm0, %v522_v1  ;;  %v326_v22 = vsel %vm325_vm4, %v320_v20, %v322_v17 }
  0x86   :  { %472 = vmatmul.mubr.msk.bf16.vlgmr.msra.gmra.mxu0 %vm44_vm2, %v12_v15  ;;  %506 = vmatprep.subr.bf16.mxu1 %v522_v1 }
  0x87   :  { %248 = vmatpush1.bf16.msra.mxu0 %v225_v18  ;;  %265 = vmatprep.mubr.bf16.mxu0 %v524_v3 }
  0x88   :  { %348 = vmatprep.subr.bf16.mxu0 %v327_v19 }
  0x8c   :  { %503 = vmatmul.mubr.msk.bf16.vlgmr.msra.gmra.mxu1 %vm44_vm2, %v474_v21 }
  0x8d   :  { %507 = vmatpush3.bf16.msra.mxu1 %v324_v16  ;;  %508 = vmatprep.mubr.msk.bf16.mxu1 %vm523_vm0, %v522_v1 }
  0x8e   :  { %475 = vmatmul.mubr.msk.bf16.vlgmr.msra.gmra.mxu0 %vm44_vm2, %v474_v21 }
  0x8f   :  { %349 = vmatpush1.bf16.msra.mxu0 %v326_v22  ;;  %366 = vmatprep.mubr.bf16.mxu0 %v524_v3 }
  0x94   :  { %509 = vmatmul.mubr.msk.bf16.vlgmr.msra.gmra.mxu1 %vm44_vm2, %v477_v23 }
  0x96   :  { %478 = vmatmul.mubr.msk.bf16.vlgmr.msra.gmra.mxu0 %vm44_vm2, %v477_v23 }
 0x13c   :  { %v123_v24 = vpop.f32.mrf.mxu1 }
 0x13e   :  { %v82_v25 = vpop.f32.mrf.mxu0  ;;  %v492_v26 = vpop.f32.mrf.mxu1 }
 0x140   :  { %v84_v27 = vpop.f32.mrf.mxu0  ;;  %v126_v28 = vpop.f32.mrf.mxu1 }
 0x142   :  { %v86_v29 = vpop.f32.mrf.mxu0  ;;  %v493_v30 = vpop.f32.mrf.mxu1 }
 0x144   :  { %v87_v31 = vpop.f32.mrf.mxu0  ;;  %v210_v32 = vpop.f32.mrf.mxu1 }
 0x145   :  { %v211_v45 = vadd.f32 %v210_v32, %v123_v24 }
 0x146   :  { %v169_v33 = vpop.f32.mrf.mxu0  ;;  %v498_v34 = vpop.f32.mrf.mxu1 }
 0x147   :  { %v170_v51 = vadd.f32 %v169_v33, %v82_v25 }
 0x148   :  { %v171_v35 = vpop.f32.mrf.mxu0  ;;  %v213_v36 = vpop.f32.mrf.mxu1 }
 0x149   :  { %v172_v58 = vadd.f32 %v171_v35, %v84_v27 }
 0x14a   :  { %v173_v37 = vpop.f32.mrf.mxu0  ;;  %v499_v38 = vpop.f32.mrf.mxu1 }
 0x14c   :  { %v174_v39 = vpop.f32.mrf.mxu0  ;;  %v308_v40 = vpop.f32.mrf.mxu1 }
 0x14d   :  { %v316_v48 = vadd.f32 %v308_v40, %v211_v45 }
 0x14e   :  { %v267_v41 = vpop.f32.mrf.mxu0  ;;  %v504_v42 = vpop.f32.mrf.mxu1 }
 0x14f   :  { %v314_v55 = vadd.f32 %v267_v41, %v170_v51 }
 0x150   :  { %v269_v43 = vpop.f32.mrf.mxu0  ;;  %v311_v44 = vpop.f32.mrf.mxu1 }
 0x151   :  { %v315_v62 = vadd.f32 %v269_v43, %v172_v58 }
 0x152   :  { %v271_v46 = vpop.f32.mrf.mxu0  ;;  %v505_v47 = vpop.f32.mrf.mxu1 }
 0x154   :  { %v272_v49 = vpop.f32.mrf.mxu0  ;;  %v409_v50 = vpop.f32.mrf.mxu1 }
 0x155   :  { %v417_v52 = vadd.f32 %v409_v50, %v316_v48 }
 0x156   :  { %v368_v53 = vpop.f32.mrf.mxu0  ;;  %v510_v54 = vpop.f32.mrf.mxu1 }
 0x157   :  { %438 = vrot.lane.b32.xlu0 %v417_v52, %s526_s16  ;;  %425 = vrot.lane.b32.xlu1 %v417_v52, %s525_s13  ;;  %v415_v59 = vadd.f32 %v368_v53, %v314_v55 }
 0x158   :  { %v370_v56 = vpop.f32.mrf.mxu0  ;;  %v412_v57 = vpop.f32.mrf.mxu1 }
 0x159   :  { %v416_v0 = vadd.f32 %v370_v56, %v315_v62 }
 0x15a   :  { %v372_v60 = vpop.f32.mrf.mxu0  ;;  %v511_v61 = vpop.f32.mrf.mxu1 }
 0x15b   :  { %434 = vrot.lane.b32.xlu0 %v415_v59, %s526_s16  ;;  %421 = vrot.lane.b32.xlu1 %v415_v59, %s525_s13 }
 0x15c   :  { %v373_v63 = vpop.f32.mrf.mxu0 }
 0x15f   :  { %447 = vrot.lane.b32.xlu1 %v415_v59, %s527_s17  ;;  %423 = vrot.lane.b32.xlu0 %v416_v0, %s525_s13 }
 0x163   :  { %436 = vrot.lane.b32.xlu1 %v416_v0, %s526_s16  ;;  %449 = vrot.lane.b32.xlu0 %v416_v0, %s527_s17 }
 0x167   :  { %451 = vrot.lane.b32.xlu1 %v417_v52, %s527_s17 }
 0x1c9   :  { %v439_v1 = vpop.permute.xlu0 %438  ;;  %v426_v2 = vpop.permute.xlu1 %425 }
 0x1cd   :  { %v435_v3 = vpop.permute.xlu0 %434  ;;  %v422_v4 = vpop.permute.xlu1 %421 }
 0x1d1   :  { %v448_v5 = vpop.permute.xlu1 %447  ;;  %v424_v6 = vpop.permute.xlu0 %423 }
 0x1d2   :  { %v428_v7 = vsel %vm38_vm1, %v422_v4, %v424_v6  ;;  %v429_v8 = vsel %vm38_vm1, %v424_v6, %v426_v2 }
 0x1d3   :  { %v432_v9 = vmax.f32 %v415_v59, %v428_v7  ;;  %v433_v14 = vmax.f32 %v416_v0, %v429_v8 }
 0x1d5   :  { %v437_v10 = vpop.permute.xlu1 %436  ;;  %v450_v11 = vpop.permute.xlu0 %449 }
 0x1d6   :  { %v441_v12 = vsel %vm224_vm3, %v435_v3, %v437_v10  ;;  %v442_v13 = vsel %vm224_vm3, %v437_v10, %v439_v1  ;;  %v454_v16 = vsel %vm325_vm4, %v448_v5, %v450_v11 }
 0x1d7   :  { %v445_v15 = vmax.f32 %v432_v9, %v441_v12  ;;  %v446_v17 = vmax.f32 %v433_v14, %v442_v13 }
 0x1d9   :  { %v458_v18 = vmax.f32 %v445_v15, %v454_v16  ;;  %v452_v19 = vpop.permute.xlu1 %451 }
 0x1da   :  { %v455_v20 = vsel %vm325_vm4, %v450_v11, %v452_v19 }
 0x1db   :  { %460 = vst [vmem:[%s626_s2] sm:$0xff] %v458_v18  ;;  %v459_v21 = vmax.f32 %v446_v17, %v455_v20 }
 0x1dd   :  { %461 = vst [vmem:[%s626_s2 + $0x8] sm:$0xff] %v459_v21 }

</bundles_post_ra>
